<compile_context>
chip_gen: v7x
topology: tpu7x:2x2x1
jax: 0.10.0
libtpu: 0.0.40
codegen_flags: <defaults>
</compile_context>

<pallas_src>
import functools

import jax
import jax.numpy as jnp
from jax.experimental import pallas as pl
from jax.experimental.pallas import tpu as pltpu

LANE = 128

# Packed-parameter layout: one flat f32 vector of 67 scalars.
W1_OFF, B1_OFF = 0, 5            # Linear(1, 5): 5 weights, 5 biases
W2_OFF, B2_OFF = 10, 50          # Linear(5, 8): 40 weights (in-major), 8 biases
W3_OFF, B3_OFF = 58, 66          # Linear(8, 1): 8 weights, 1 bias
N_PARAMS = 67


def mlp_kernel(p_ref, x_ref, o_ref, *, chunk_rows, n_chunks, compute_dtype):
    """p_ref: (67,) f32 in SMEM. x_ref / o_ref: (tr, 128) f32 tiles in VMEM.

    The (tr, 128) block is processed in (chunk_rows, 128) sublane chunks so all
    intermediates stay in vregs; layer 3 is folded into the layer-2 loop.
    """
    cdt = compute_dtype

    # Hoist the 67 scalar SMEM reads out of the chunk loop (loop-invariant).
    w1 = [p_ref[W1_OFF + i].astype(cdt) for i in range(5)]
    b1 = [p_ref[B1_OFF + i].astype(cdt) for i in range(5)]
    # w2[j][i] == torch w2[i, j] (weight from input i to output j)
    w2 = [[p_ref[W2_OFF + i * 8 + j].astype(cdt) for i in range(5)]
          for j in range(8)]
    b2 = [p_ref[B2_OFF + j].astype(cdt) for j in range(8)]
    w3 = [p_ref[W3_OFF + j].astype(cdt) for j in range(8)]
    b3 = p_ref[B3_OFF].astype(cdt)

    @pl.loop(0, n_chunks)
    def _(c):
        r0 = pl.multiple_of(c * chunk_rows, chunk_rows)
        x = x_ref[pl.ds(r0, chunk_rows), :].astype(cdt)        # (CH, 128)

        # Layer 1: 1 -> 5, ReLU.  5 scalar-broadcast FMAs on the VPU.
        h1 = [jnp.maximum(w1[i] * x + b1[i], 0.0) for i in range(5)]

        # Layers 2 + 3 fused: for each of the 8 hidden-2 units, accumulate its
        # 5-input FMA chain, ReLU, and immediately fold it into y.
        y = None
        for j in range(8):
            acc = w2[j][0] * h1[0]
            for i in range(1, 5):
                acc = acc + w2[j][i] * h1[i]
            h2j = jnp.maximum(acc + b2[j], 0.0)
            y = (w3[j] * h2j) if y is None else (y + w3[j] * h2j)
        y = y + b3

        o_ref[pl.ds(r0, chunk_rows), :] = y.astype(o_ref.dtype)


def _round_up(a, b):
    return ((a + b - 1) // b) * b


def pack_params(p):
    """Flatten (in,out)-layout weights + biases into one (67,) f32 vector."""
    return jnp.concatenate([
        p["w1"].reshape(-1), p["b1"].reshape(-1),
        p["w2"].reshape(-1), p["b2"].reshape(-1),
        p["w3"].reshape(-1), p["b3"].reshape(-1),
    ]).astype(jnp.float32)


def mlp_forward(x, params, *, block_rows=2048, compute_dtype=jnp.float32):
    """x: (N, 1) float32. params: dict w1,b1,w2,b2,w3,b3 stored as (in, out).

    compute_dtype=jnp.bfloat16 is a valid speed knob on v6e/v7x (2x elements
    per vreg op); keep jnp.float32 on v5e and for tight-tolerance checks.
    """
    N = x.shape[0]
    p_flat = pack_params(params)
    assert p_flat.shape == (N_PARAMS,)

    # Lane-dense relayout: batch on the lane axis, (8,128)-aligned rows.
    rows = _round_up(max(1, pl.cdiv(N, LANE)), 8)
    tr = min(_round_up(block_rows, 8), rows)      # row-tile, multiple of 8
    grid = pl.cdiv(rows, tr)                      # ragged last block is fine

    # In-kernel strip-mine chunk: largest of {32,16,8} sublanes dividing tr.
    if tr % 32 == 0:
        ch = 32
    elif tr % 16 == 0:
        ch = 16
    else:
        ch = 8
    n_chunks = tr // ch

    x_slab = jnp.pad(x.reshape(-1), (0, rows * LANE - N)).reshape(rows, LANE)

    kernel = functools.partial(
        mlp_kernel, chunk_rows=ch, n_chunks=n_chunks, compute_dtype=compute_dtype)

    out_slab = pl.pallas_call(
        kernel,
        out_shape=jax.ShapeDtypeStruct((rows, LANE), jnp.float32),
        grid=(grid,),
        in_specs=[
            pl.BlockSpec(memory_space=pltpu.MemorySpace.SMEM),   # packed params
            pl.BlockSpec((tr, LANE), lambda i: (i, 0)),          # x row tiles
        ],
        out_specs=pl.BlockSpec((tr, LANE), lambda i: (i, 0)),
        compiler_params=pltpu.CompilerParams(
            dimension_semantics=("parallel",)),
    )(p_flat, x_slab)

    return out_slab.reshape(-1)[:N].reshape(N, 1)


def init_params(key):
    """Deterministic init matching nn.Linear shapes 1->5->8->1.
    Weights stored transposed relative to torch: (in, out)."""
    k1, k2, k3, k4, k5, k6 = jax.random.split(key, 6)

    def uniform(k, shape, fan_in):
        bound = 1.0 / jnp.sqrt(jnp.float32(fan_in))
        return jax.random.uniform(k, shape, jnp.float32, -bound, bound)

    return {
        "w1": uniform(k1, (1, 5), 1),  "b1": uniform(k2, (1, 5), 1),
        "w2": uniform(k3, (5, 8), 5),  "b2": uniform(k4, (1, 8), 5),
        "w3": uniform(k5, (8, 1), 8),  "b3": uniform(k6, (1, 1), 8),
    }


def mlp_reference(x, p):
    h1 = jnp.maximum(x @ p["w1"] + p["b1"], 0.0)
    h2 = jnp.maximum(h1 @ p["w2"] + p["b2"], 0.0)
    return h2 @ p["w3"] + p["b3"]


if __name__ == "__main__":
    key = jax.random.PRNGKey(0)
    params = init_params(key)

    # Input consistent with the module: N_SAMPLES scalars in [-6, 6], shape (N, 1).
    N = 1000  # deliberately not a multiple of 128 to exercise the padding path
    x = jnp.linspace(-6.0, 6.0, N, dtype=jnp.float32).reshape(N, 1)

    out = mlp_forward(x, params)
    out = jax.block_until_ready(out)

    ref = mlp_reference(x, params)
    assert out.shape == (N, 1)
    assert jnp.allclose(out, ref, atol=1e-5, rtol=1e-5)

    print("KERNEL_OK")
</pallas_src>

<mosaic_0001>
module attributes {stable_mosaic.version = 11 : i64} {
  func.func @mlp_kernel(%arg0: i32, %arg1: memref<67xf32, #tpu.memory_space<smem>>, %arg2: memref<8x128xf32, #tpu.memory_space<vmem>>, %arg3: memref<8x128xf32, #tpu.memory_space<vmem>>) attributes {dimension_semantics = [#tpu.dimension_semantics<parallel>], iteration_bounds = array<i64: 1>, scalar_prefetch = 0 : i64, scratch_operands = 0 : i64, tpu.core_type = #tpu.core_type<tc>, window_params = [{transform_indices = @transform_0, window_bounds = array<i64: 67>}, {transform_indices = @transform_1, window_bounds = array<i64: 8, 128>}, {transform_indices = @transform_2, window_bounds = array<i64: 8, 128>}]} {
    %c0 = arith.constant 0 : index
    %0 = memref.load %arg1[%c0] : memref<67xf32, #tpu.memory_space<smem>>
    %c1 = arith.constant 1 : index
    %1 = memref.load %arg1[%c1] : memref<67xf32, #tpu.memory_space<smem>>
    %c2 = arith.constant 2 : index
    %2 = memref.load %arg1[%c2] : memref<67xf32, #tpu.memory_space<smem>>
    %c3 = arith.constant 3 : index
    %3 = memref.load %arg1[%c3] : memref<67xf32, #tpu.memory_space<smem>>
    %c4 = arith.constant 4 : index
    %4 = memref.load %arg1[%c4] : memref<67xf32, #tpu.memory_space<smem>>
    %c5 = arith.constant 5 : index
    %5 = memref.load %arg1[%c5] : memref<67xf32, #tpu.memory_space<smem>>
    %c6 = arith.constant 6 : index
    %6 = memref.load %arg1[%c6] : memref<67xf32, #tpu.memory_space<smem>>
    %c7 = arith.constant 7 : index
    %7 = memref.load %arg1[%c7] : memref<67xf32, #tpu.memory_space<smem>>
    %c8 = arith.constant 8 : index
    %8 = memref.load %arg1[%c8] : memref<67xf32, #tpu.memory_space<smem>>
    %c9 = arith.constant 9 : index
    %9 = memref.load %arg1[%c9] : memref<67xf32, #tpu.memory_space<smem>>
    %c10 = arith.constant 10 : index
    %10 = memref.load %arg1[%c10] : memref<67xf32, #tpu.memory_space<smem>>
    %c18 = arith.constant 18 : index
    %11 = memref.load %arg1[%c18] : memref<67xf32, #tpu.memory_space<smem>>
    %c26 = arith.constant 26 : index
    %12 = memref.load %arg1[%c26] : memref<67xf32, #tpu.memory_space<smem>>
    %c34 = arith.constant 34 : index
    %13 = memref.load %arg1[%c34] : memref<67xf32, #tpu.memory_space<smem>>
    %c42 = arith.constant 42 : index
    %14 = memref.load %arg1[%c42] : memref<67xf32, #tpu.memory_space<smem>>
    %c11 = arith.constant 11 : index
    %15 = memref.load %arg1[%c11] : memref<67xf32, #tpu.memory_space<smem>>
    %c19 = arith.constant 19 : index
    %16 = memref.load %arg1[%c19] : memref<67xf32, #tpu.memory_space<smem>>
    %c27 = arith.constant 27 : index
    %17 = memref.load %arg1[%c27] : memref<67xf32, #tpu.memory_space<smem>>
    %c35 = arith.constant 35 : index
    %18 = memref.load %arg1[%c35] : memref<67xf32, #tpu.memory_space<smem>>
    %c43 = arith.constant 43 : index
    %19 = memref.load %arg1[%c43] : memref<67xf32, #tpu.memory_space<smem>>
    %c12 = arith.constant 12 : index
    %20 = memref.load %arg1[%c12] : memref<67xf32, #tpu.memory_space<smem>>
    %c20 = arith.constant 20 : index
    %21 = memref.load %arg1[%c20] : memref<67xf32, #tpu.memory_space<smem>>
    %c28 = arith.constant 28 : index
    %22 = memref.load %arg1[%c28] : memref<67xf32, #tpu.memory_space<smem>>
    %c36 = arith.constant 36 : index
    %23 = memref.load %arg1[%c36] : memref<67xf32, #tpu.memory_space<smem>>
    %c44 = arith.constant 44 : index
    %24 = memref.load %arg1[%c44] : memref<67xf32, #tpu.memory_space<smem>>
    %c13 = arith.constant 13 : index
    %25 = memref.load %arg1[%c13] : memref<67xf32, #tpu.memory_space<smem>>
    %c21 = arith.constant 21 : index
    %26 = memref.load %arg1[%c21] : memref<67xf32, #tpu.memory_space<smem>>
    %c29 = arith.constant 29 : index
    %27 = memref.load %arg1[%c29] : memref<67xf32, #tpu.memory_space<smem>>
    %c37 = arith.constant 37 : index
    %28 = memref.load %arg1[%c37] : memref<67xf32, #tpu.memory_space<smem>>
    %c45 = arith.constant 45 : index
    %29 = memref.load %arg1[%c45] : memref<67xf32, #tpu.memory_space<smem>>
    %c14 = arith.constant 14 : index
    %30 = memref.load %arg1[%c14] : memref<67xf32, #tpu.memory_space<smem>>
    %c22 = arith.constant 22 : index
    %31 = memref.load %arg1[%c22] : memref<67xf32, #tpu.memory_space<smem>>
    %c30 = arith.constant 30 : index
    %32 = memref.load %arg1[%c30] : memref<67xf32, #tpu.memory_space<smem>>
    %c38 = arith.constant 38 : index
    %33 = memref.load %arg1[%c38] : memref<67xf32, #tpu.memory_space<smem>>
    %c46 = arith.constant 46 : index
    %34 = memref.load %arg1[%c46] : memref<67xf32, #tpu.memory_space<smem>>
    %c15 = arith.constant 15 : index
    %35 = memref.load %arg1[%c15] : memref<67xf32, #tpu.memory_space<smem>>
    %c23 = arith.constant 23 : index
    %36 = memref.load %arg1[%c23] : memref<67xf32, #tpu.memory_space<smem>>
    %c31 = arith.constant 31 : index
    %37 = memref.load %arg1[%c31] : memref<67xf32, #tpu.memory_space<smem>>
    %c39 = arith.constant 39 : index
    %38 = memref.load %arg1[%c39] : memref<67xf32, #tpu.memory_space<smem>>
    %c47 = arith.constant 47 : index
    %39 = memref.load %arg1[%c47] : memref<67xf32, #tpu.memory_space<smem>>
    %c16 = arith.constant 16 : index
    %40 = memref.load %arg1[%c16] : memref<67xf32, #tpu.memory_space<smem>>
    %c24 = arith.constant 24 : index
    %41 = memref.load %arg1[%c24] : memref<67xf32, #tpu.memory_space<smem>>
    %c32 = arith.constant 32 : index
    %42 = memref.load %arg1[%c32] : memref<67xf32, #tpu.memory_space<smem>>
    %c40 = arith.constant 40 : index
    %43 = memref.load %arg1[%c40] : memref<67xf32, #tpu.memory_space<smem>>
    %c48 = arith.constant 48 : index
    %44 = memref.load %arg1[%c48] : memref<67xf32, #tpu.memory_space<smem>>
    %c17 = arith.constant 17 : index
    %45 = memref.load %arg1[%c17] : memref<67xf32, #tpu.memory_space<smem>>
    %c25 = arith.constant 25 : index
    %46 = memref.load %arg1[%c25] : memref<67xf32, #tpu.memory_space<smem>>
    %c33 = arith.constant 33 : index
    %47 = memref.load %arg1[%c33] : memref<67xf32, #tpu.memory_space<smem>>
    %c41 = arith.constant 41 : index
    %48 = memref.load %arg1[%c41] : memref<67xf32, #tpu.memory_space<smem>>
    %c49 = arith.constant 49 : index
    %49 = memref.load %arg1[%c49] : memref<67xf32, #tpu.memory_space<smem>>
    %c50 = arith.constant 50 : index
    %50 = memref.load %arg1[%c50] : memref<67xf32, #tpu.memory_space<smem>>
    %c51 = arith.constant 51 : index
    %51 = memref.load %arg1[%c51] : memref<67xf32, #tpu.memory_space<smem>>
    %c52 = arith.constant 52 : index
    %52 = memref.load %arg1[%c52] : memref<67xf32, #tpu.memory_space<smem>>
    %c53 = arith.constant 53 : index
    %53 = memref.load %arg1[%c53] : memref<67xf32, #tpu.memory_space<smem>>
    %c54 = arith.constant 54 : index
    %54 = memref.load %arg1[%c54] : memref<67xf32, #tpu.memory_space<smem>>
    %c55 = arith.constant 55 : index
    %55 = memref.load %arg1[%c55] : memref<67xf32, #tpu.memory_space<smem>>
    %c56 = arith.constant 56 : index
    %56 = memref.load %arg1[%c56] : memref<67xf32, #tpu.memory_space<smem>>
    %c57 = arith.constant 57 : index
    %57 = memref.load %arg1[%c57] : memref<67xf32, #tpu.memory_space<smem>>
    %c58 = arith.constant 58 : index
    %58 = memref.load %arg1[%c58] : memref<67xf32, #tpu.memory_space<smem>>
    %c59 = arith.constant 59 : index
    %59 = memref.load %arg1[%c59] : memref<67xf32, #tpu.memory_space<smem>>
    %c60 = arith.constant 60 : index
    %60 = memref.load %arg1[%c60] : memref<67xf32, #tpu.memory_space<smem>>
    %c61 = arith.constant 61 : index
    %61 = memref.load %arg1[%c61] : memref<67xf32, #tpu.memory_space<smem>>
    %c62 = arith.constant 62 : index
    %62 = memref.load %arg1[%c62] : memref<67xf32, #tpu.memory_space<smem>>
    %c63 = arith.constant 63 : index
    %63 = memref.load %arg1[%c63] : memref<67xf32, #tpu.memory_space<smem>>
    %c64 = arith.constant 64 : index
    %64 = memref.load %arg1[%c64] : memref<67xf32, #tpu.memory_space<smem>>
    %c65 = arith.constant 65 : index
    %65 = memref.load %arg1[%c65] : memref<67xf32, #tpu.memory_space<smem>>
    %c66 = arith.constant 66 : index
    %66 = memref.load %arg1[%c66] : memref<67xf32, #tpu.memory_space<smem>>
    %c0_i32 = arith.constant 0 : i32
    %c1_i32 = arith.constant 1 : i32
    %67 = arith.muli %c0_i32, %c1_i32 : i32
    %c0_i32_0 = arith.constant 0 : i32
    %68 = arith.addi %c0_i32_0, %67 : i32
    %c8_i32 = arith.constant 8 : i32
    %69 = arith.muli %68, %c8_i32 : i32
    %70 = tpu.assume_multiple %69, 8 : i32
    %71 = arith.index_cast %70 : i32 to index
    %c0_1 = arith.constant 0 : index
    %72 = vector.load %arg2[%71, %c0_1] : memref<8x128xf32, #tpu.memory_space<vmem>>, vector<8x128xf32>
    %73 = vector.broadcast %0 : f32 to vector<8x128xf32>
    %74 = arith.mulf %73, %72 : vector<8x128xf32>
    %75 = vector.broadcast %5 : f32 to vector<8x128xf32>
    %76 = arith.addf %74, %75 : vector<8x128xf32>
    %cst = arith.constant 0.000000e+00 : f32
    %77 = vector.broadcast %cst : f32 to vector<8x128xf32>
    %78 = arith.maximumf %76, %77 : vector<8x128xf32>
    %79 = vector.broadcast %1 : f32 to vector<8x128xf32>
    %80 = arith.mulf %79, %72 : vector<8x128xf32>
    %81 = vector.broadcast %6 : f32 to vector<8x128xf32>
    %82 = arith.addf %80, %81 : vector<8x128xf32>
    %cst_2 = arith.constant 0.000000e+00 : f32
    %83 = vector.broadcast %cst_2 : f32 to vector<8x128xf32>
    %84 = arith.maximumf %82, %83 : vector<8x128xf32>
    %85 = vector.broadcast %2 : f32 to vector<8x128xf32>
    %86 = arith.mulf %85, %72 : vector<8x128xf32>
    %87 = vector.broadcast %7 : f32 to vector<8x128xf32>
    %88 = arith.addf %86, %87 : vector<8x128xf32>
    %cst_3 = arith.constant 0.000000e+00 : f32
    %89 = vector.broadcast %cst_3 : f32 to vector<8x128xf32>
    %90 = arith.maximumf %88, %89 : vector<8x128xf32>
    %91 = vector.broadcast %3 : f32 to vector<8x128xf32>
    %92 = arith.mulf %91, %72 : vector<8x128xf32>
    %93 = vector.broadcast %8 : f32 to vector<8x128xf32>
    %94 = arith.addf %92, %93 : vector<8x128xf32>
    %cst_4 = arith.constant 0.000000e+00 : f32
    %95 = vector.broadcast %cst_4 : f32 to vector<8x128xf32>
    %96 = arith.maximumf %94, %95 : vector<8x128xf32>
    %97 = vector.broadcast %4 : f32 to vector<8x128xf32>
    %98 = arith.mulf %97, %72 : vector<8x128xf32>
    %99 = vector.broadcast %9 : f32 to vector<8x128xf32>
    %100 = arith.addf %98, %99 : vector<8x128xf32>
    %cst_5 = arith.constant 0.000000e+00 : f32
    %101 = vector.broadcast %cst_5 : f32 to vector<8x128xf32>
    %102 = arith.maximumf %100, %101 : vector<8x128xf32>
    %103 = vector.broadcast %10 : f32 to vector<8x128xf32>
    %104 = arith.mulf %103, %78 : vector<8x128xf32>
    %105 = vector.broadcast %11 : f32 to vector<8x128xf32>
    %106 = arith.mulf %105, %84 : vector<8x128xf32>
    %107 = arith.addf %104, %106 : vector<8x128xf32>
    %108 = vector.broadcast %12 : f32 to vector<8x128xf32>
    %109 = arith.mulf %108, %90 : vector<8x128xf32>
    %110 = arith.addf %107, %109 : vector<8x128xf32>
    %111 = vector.broadcast %13 : f32 to vector<8x128xf32>
    %112 = arith.mulf %111, %96 : vector<8x128xf32>
    %113 = arith.addf %110, %112 : vector<8x128xf32>
    %114 = vector.broadcast %14 : f32 to vector<8x128xf32>
    %115 = arith.mulf %114, %102 : vector<8x128xf32>
    %116 = arith.addf %113, %115 : vector<8x128xf32>
    %117 = vector.broadcast %50 : f32 to vector<8x128xf32>
    %118 = arith.addf %116, %117 : vector<8x128xf32>
    %cst_6 = arith.constant 0.000000e+00 : f32
    %119 = vector.broadcast %cst_6 : f32 to vector<8x128xf32>
    %120 = arith.maximumf %118, %119 : vector<8x128xf32>
    %121 = vector.broadcast %58 : f32 to vector<8x128xf32>
    %122 = arith.mulf %121, %120 : vector<8x128xf32>
    %123 = vector.broadcast %15 : f32 to vector<8x128xf32>
    %124 = arith.mulf %123, %78 : vector<8x128xf32>
    %125 = vector.broadcast %16 : f32 to vector<8x128xf32>
    %126 = arith.mulf %125, %84 : vector<8x128xf32>
    %127 = arith.addf %124, %126 : vector<8x128xf32>
    %128 = vector.broadcast %17 : f32 to vector<8x128xf32>
    %129 = arith.mulf %128, %90 : vector<8x128xf32>
    %130 = arith.addf %127, %129 : vector<8x128xf32>
    %131 = vector.broadcast %18 : f32 to vector<8x128xf32>
    %132 = arith.mulf %131, %96 : vector<8x128xf32>
    %133 = arith.addf %130, %132 : vector<8x128xf32>
    %134 = vector.broadcast %19 : f32 to vector<8x128xf32>
    %135 = arith.mulf %134, %102 : vector<8x128xf32>
    %136 = arith.addf %133, %135 : vector<8x128xf32>
    %137 = vector.broadcast %51 : f32 to vector<8x128xf32>
    %138 = arith.addf %136, %137 : vector<8x128xf32>
    %cst_7 = arith.constant 0.000000e+00 : f32
    %139 = vector.broadcast %cst_7 : f32 to vector<8x128xf32>
    %140 = arith.maximumf %138, %139 : vector<8x128xf32>
    %141 = vector.broadcast %59 : f32 to vector<8x128xf32>
    %142 = arith.mulf %141, %140 : vector<8x128xf32>
    %143 = arith.addf %122, %142 : vector<8x128xf32>
    %144 = vector.broadcast %20 : f32 to vector<8x128xf32>
    %145 = arith.mulf %144, %78 : vector<8x128xf32>
    %146 = vector.broadcast %21 : f32 to vector<8x128xf32>
    %147 = arith.mulf %146, %84 : vector<8x128xf32>
    %148 = arith.addf %145, %147 : vector<8x128xf32>
    %149 = vector.broadcast %22 : f32 to vector<8x128xf32>
    %150 = arith.mulf %149, %90 : vector<8x128xf32>
    %151 = arith.addf %148, %150 : vector<8x128xf32>
    %152 = vector.broadcast %23 : f32 to vector<8x128xf32>
    %153 = arith.mulf %152, %96 : vector<8x128xf32>
    %154 = arith.addf %151, %153 : vector<8x128xf32>
    %155 = vector.broadcast %24 : f32 to vector<8x128xf32>
    %156 = arith.mulf %155, %102 : vector<8x128xf32>
    %157 = arith.addf %154, %156 : vector<8x128xf32>
    %158 = vector.broadcast %52 : f32 to vector<8x128xf32>
    %159 = arith.addf %157, %158 : vector<8x128xf32>
    %cst_8 = arith.constant 0.000000e+00 : f32
    %160 = vector.broadcast %cst_8 : f32 to vector<8x128xf32>
    %161 = arith.maximumf %159, %160 : vector<8x128xf32>
    %162 = vector.broadcast %60 : f32 to vector<8x128xf32>
    %163 = arith.mulf %162, %161 : vector<8x128xf32>
    %164 = arith.addf %143, %163 : vector<8x128xf32>
    %165 = vector.broadcast %25 : f32 to vector<8x128xf32>
    %166 = arith.mulf %165, %78 : vector<8x128xf32>
    %167 = vector.broadcast %26 : f32 to vector<8x128xf32>
    %168 = arith.mulf %167, %84 : vector<8x128xf32>
    %169 = arith.addf %166, %168 : vector<8x128xf32>
    %170 = vector.broadcast %27 : f32 to vector<8x128xf32>
    %171 = arith.mulf %170, %90 : vector<8x128xf32>
    %172 = arith.addf %169, %171 : vector<8x128xf32>
    %173 = vector.broadcast %28 : f32 to vector<8x128xf32>
    %174 = arith.mulf %173, %96 : vector<8x128xf32>
    %175 = arith.addf %172, %174 : vector<8x128xf32>
    %176 = vector.broadcast %29 : f32 to vector<8x128xf32>
    %177 = arith.mulf %176, %102 : vector<8x128xf32>
    %178 = arith.addf %175, %177 : vector<8x128xf32>
    %179 = vector.broadcast %53 : f32 to vector<8x128xf32>
    %180 = arith.addf %178, %179 : vector<8x128xf32>
    %cst_9 = arith.constant 0.000000e+00 : f32
    %181 = vector.broadcast %cst_9 : f32 to vector<8x128xf32>
    %182 = arith.maximumf %180, %181 : vector<8x128xf32>
    %183 = vector.broadcast %61 : f32 to vector<8x128xf32>
    %184 = arith.mulf %183, %182 : vector<8x128xf32>
    %185 = arith.addf %164, %184 : vector<8x128xf32>
    %186 = vector.broadcast %30 : f32 to vector<8x128xf32>
    %187 = arith.mulf %186, %78 : vector<8x128xf32>
    %188 = vector.broadcast %31 : f32 to vector<8x128xf32>
    %189 = arith.mulf %188, %84 : vector<8x128xf32>
    %190 = arith.addf %187, %189 : vector<8x128xf32>
    %191 = vector.broadcast %32 : f32 to vector<8x128xf32>
    %192 = arith.mulf %191, %90 : vector<8x128xf32>
    %193 = arith.addf %190, %192 : vector<8x128xf32>
    %194 = vector.broadcast %33 : f32 to vector<8x128xf32>
    %195 = arith.mulf %194, %96 : vector<8x128xf32>
    %196 = arith.addf %193, %195 : vector<8x128xf32>
    %197 = vector.broadcast %34 : f32 to vector<8x128xf32>
    %198 = arith.mulf %197, %102 : vector<8x128xf32>
    %199 = arith.addf %196, %198 : vector<8x128xf32>
    %200 = vector.broadcast %54 : f32 to vector<8x128xf32>
    %201 = arith.addf %199, %200 : vector<8x128xf32>
    %cst_10 = arith.constant 0.000000e+00 : f32
    %202 = vector.broadcast %cst_10 : f32 to vector<8x128xf32>
    %203 = arith.maximumf %201, %202 : vector<8x128xf32>
    %204 = vector.broadcast %62 : f32 to vector<8x128xf32>
    %205 = arith.mulf %204, %203 : vector<8x128xf32>
    %206 = arith.addf %185, %205 : vector<8x128xf32>
    %207 = vector.broadcast %35 : f32 to vector<8x128xf32>
    %208 = arith.mulf %207, %78 : vector<8x128xf32>
    %209 = vector.broadcast %36 : f32 to vector<8x128xf32>
    %210 = arith.mulf %209, %84 : vector<8x128xf32>
    %211 = arith.addf %208, %210 : vector<8x128xf32>
    %212 = vector.broadcast %37 : f32 to vector<8x128xf32>
    %213 = arith.mulf %212, %90 : vector<8x128xf32>
    %214 = arith.addf %211, %213 : vector<8x128xf32>
    %215 = vector.broadcast %38 : f32 to vector<8x128xf32>
    %216 = arith.mulf %215, %96 : vector<8x128xf32>
    %217 = arith.addf %214, %216 : vector<8x128xf32>
    %218 = vector.broadcast %39 : f32 to vector<8x128xf32>
    %219 = arith.mulf %218, %102 : vector<8x128xf32>
    %220 = arith.addf %217, %219 : vector<8x128xf32>
    %221 = vector.broadcast %55 : f32 to vector<8x128xf32>
    %222 = arith.addf %220, %221 : vector<8x128xf32>
    %cst_11 = arith.constant 0.000000e+00 : f32
    %223 = vector.broadcast %cst_11 : f32 to vector<8x128xf32>
    %224 = arith.maximumf %222, %223 : vector<8x128xf32>
    %225 = vector.broadcast %63 : f32 to vector<8x128xf32>
    %226 = arith.mulf %225, %224 : vector<8x128xf32>
    %227 = arith.addf %206, %226 : vector<8x128xf32>
    %228 = vector.broadcast %40 : f32 to vector<8x128xf32>
    %229 = arith.mulf %228, %78 : vector<8x128xf32>
    %230 = vector.broadcast %41 : f32 to vector<8x128xf32>
    %231 = arith.mulf %230, %84 : vector<8x128xf32>
    %232 = arith.addf %229, %231 : vector<8x128xf32>
    %233 = vector.broadcast %42 : f32 to vector<8x128xf32>
    %234 = arith.mulf %233, %90 : vector<8x128xf32>
    %235 = arith.addf %232, %234 : vector<8x128xf32>
    %236 = vector.broadcast %43 : f32 to vector<8x128xf32>
    %237 = arith.mulf %236, %96 : vector<8x128xf32>
    %238 = arith.addf %235, %237 : vector<8x128xf32>
    %239 = vector.broadcast %44 : f32 to vector<8x128xf32>
    %240 = arith.mulf %239, %102 : vector<8x128xf32>
    %241 = arith.addf %238, %240 : vector<8x128xf32>
    %242 = vector.broadcast %56 : f32 to vector<8x128xf32>
    %243 = arith.addf %241, %242 : vector<8x128xf32>
    %cst_12 = arith.constant 0.000000e+00 : f32
    %244 = vector.broadcast %cst_12 : f32 to vector<8x128xf32>
    %245 = arith.maximumf %243, %244 : vector<8x128xf32>
    %246 = vector.broadcast %64 : f32 to vector<8x128xf32>
    %247 = arith.mulf %246, %245 : vector<8x128xf32>
    %248 = arith.addf %227, %247 : vector<8x128xf32>
    %249 = vector.broadcast %45 : f32 to vector<8x128xf32>
    %250 = arith.mulf %249, %78 : vector<8x128xf32>
    %251 = vector.broadcast %46 : f32 to vector<8x128xf32>
    %252 = arith.mulf %251, %84 : vector<8x128xf32>
    %253 = arith.addf %250, %252 : vector<8x128xf32>
    %254 = vector.broadcast %47 : f32 to vector<8x128xf32>
    %255 = arith.mulf %254, %90 : vector<8x128xf32>
    %256 = arith.addf %253, %255 : vector<8x128xf32>
    %257 = vector.broadcast %48 : f32 to vector<8x128xf32>
    %258 = arith.mulf %257, %96 : vector<8x128xf32>
    %259 = arith.addf %256, %258 : vector<8x128xf32>
    %260 = vector.broadcast %49 : f32 to vector<8x128xf32>
    %261 = arith.mulf %260, %102 : vector<8x128xf32>
    %262 = arith.addf %259, %261 : vector<8x128xf32>
    %263 = vector.broadcast %57 : f32 to vector<8x128xf32>
    %264 = arith.addf %262, %263 : vector<8x128xf32>
    %cst_13 = arith.constant 0.000000e+00 : f32
    %265 = vector.broadcast %cst_13 : f32 to vector<8x128xf32>
    %266 = arith.maximumf %264, %265 : vector<8x128xf32>
    %267 = vector.broadcast %65 : f32 to vector<8x128xf32>
    %268 = arith.mulf %267, %266 : vector<8x128xf32>
    %269 = arith.addf %248, %268 : vector<8x128xf32>
    %270 = vector.broadcast %66 : f32 to vector<8x128xf32>
    %271 = arith.addf %269, %270 : vector<8x128xf32>
    %272 = arith.index_cast %70 : i32 to index
    %c0_14 = arith.constant 0 : index
    %273 = vector.load %arg3[%272, %c0_14] : memref<8x128xf32, #tpu.memory_space<vmem>>, vector<8x128xf32>
    tpu.vector_store %arg3[%272, %c0_14], %271 {strides = array<i32>} : memref<8x128xf32, #tpu.memory_space<vmem>>, vector<8x128xf32>,
    %c1_i32_15 = arith.constant 1 : i32
    return
  }
  func.func @transform_0(%arg0: i32) -> i32 {
    %c0_i32 = arith.constant 0 : i32
    %c0_i32_0 = arith.constant 0 : i32
    return %c0_i32 : i32
  }
  func.func @transform_1(%arg0: i32) -> (i32, i32) {
    %c0_i32 = arith.constant 0 : i32
    %c0_i32_0 = arith.constant 0 : i32
    return %arg0, %c0_i32 : i32, i32
  }
  func.func @transform_2(%arg0: i32) -> (i32, i32) {
    %c0_i32 = arith.constant 0 : i32
    %c0_i32_0 = arith.constant 0 : i32
    return %arg0, %c0_i32 : i32, i32
  }
}

</mosaic_0001>

<bundles_post_ra>
// kernel: tpu_custom_call.1
= control target key start
LH: loop header
LB: loop body
LE: loop exit
PB: predicated region body
PF: predicated region fallthrough
CT: control target
= control target key end

     0   :  { %7 = vsyncpa [#allocation5], 0  ;;  %s719_s0 = inlined_call_operand.hbm [shape: f32[67], index: 0, kind: input, shape index: {}]   ;;  %s720_s1 = inlined_call_operand.hbm [shape: f32[8,128], index: 1, kind: input, shape index: {}]   ;;  %s721_s2 = inlined_call_operand.hbm [shape: f32[8,128], index: 2, kind: output, shape index: {}]  }
   0x1   :  { %8 = vsyncpa [#allocation3], 0 }
   0x2   :  { %9 = vsyncpa [#allocation4], 0  ;;  %s375_s11 = scalar_lea.hbm %s719_s0, 16 }
   0x3   :  { %p376_p0 = scmp.ne.s32.totalorder %s719_s0, %s375_s11  ;;  %p379_p1 = scmp.lt.u32.totalorder %s375_s11, %s719_s0 }
   0x5   :  { %p381_p2 = pnand %p379_p1, %p376_p0 }
   0x7   :  { %384 = shalt.err (!%p381_p2)
}
   0x8   :  { %s435_s16 = smov [#allocation2]   ;;  %s436_s19 = smov [#allocation6]  }
   0x9   :  { %17 = dma.hbm_to_smem %s719_s0, 16, %s435_s16, [#allocation5]  }
   0xa   :  { %s24_s20 = sshll.u32 %s436_s19, 4  ;;  %s385_s23 = scalar_lea.hbm %s720_s1, 128  ;;  %s25_s20 = int_to_ptr.vmem [resolvable:$true] %s24_s20 }
   0xb   :  { %p386_p3 = scmp.ne.s32.totalorder %s720_s1, %s385_s23  ;;  %p389_p4 = scmp.lt.u32.totalorder %s385_s23, %s720_s1 }
   0xd   :  { %p391_p5 = pnand %p389_p4, %p386_p3 }
   0xf   :  { %394 = shalt.err (!%p391_p5)
}
  0x10   :  { %s395_s28 = scalar_lea.vmem %s25_s20, 128  ;;  %p400_p7 = scmp.lt.s32.totalorder %s25_s20, %s25_s20 }
  0x11   :  { %p396_p6 = scmp.ne.s32.totalorder %s25_s20, %s395_s28  ;;  %p401_p8 = scmp.lt.s32.totalorder %s395_s28, %s395_s28 }
  0x13   :  { %p402_p9 = por %p401_p8, %p400_p7 }
  0x15   :  { %p403_p10 = pnand %p402_p9, %p396_p6 }
  0x17   :  { %406 = shalt.err (!%p403_p10)
}
  0x18   :  { %27 = dma.hbm_to_vmem [thread:$0]  %s720_s1, 128, %s25_s20, [#allocation3]  }
  0x19   :  { %429 = dma.done.wait [#allocation5], 16  }
  0x1a   :  { %430 = vsyncadd [#allocation5], 4294967280 }
  0x1b   :  { %431 = dma.done.wait [#allocation3], 128  }
  0x1c   :  { %432 = vsyncadd [#allocation3], 4294967168 }
  0x1d   :  { %34 = sfence }
  0x1e   :  { %s35_s30 = sld [smem:[#allocation2]]  ;;  %s306_s3 = sld [smem:[#allocation2 + $0x1]]  ;;  %v102_v0 = vld [vmem:[#allocation6] sm:$0xff] }
  0x1f   :  { %s307_s4 = sld [smem:[#allocation2 + $0x2]]  ;;  %s308_s5 = sld [smem:[#allocation2 + $0x3]] }
  0x20   :  { %s477_s6 = sld [smem:[#allocation2 + $0x4]]  ;;  %s310_s7 = sld [smem:[#allocation2 + $0x5]] }
  0x21   :  { %s479_s8 = sld [smem:[#allocation2 + $0x6]]  ;;  %s481_s9 = sld [smem:[#allocation2 + $0x7]] }
  0x22   :  { %s483_s10 = sld [smem:[#allocation2 + $0x8]]  ;;  %s485_s11 = sld [smem:[#allocation2 + $0x9]] }
  0x23   :  { %s487_s1 = sld [smem:[#allocation2 + $0xa]]  ;;  %s497_s16 = sld [smem:[#allocation2 + $0xb]] }
  0x24   :  { %s489_s12 = sld [smem:[#allocation2 + $0x12]]  ;;  %v103_v1 = vstv %s35_s30  ;;  %v108_v2 = vstv %s306_s3  ;;  %s499_s17 = sld [smem:[#allocation2 + $0x13]] }
  0x25   :  { %s491_s13 = sld [smem:[#allocation2 + $0x1a]]  ;;  %v104_v3 = vmul.f32 %v103_v1, %v102_v0  ;;  %v109_v4 = vmul.f32 %v108_v2, %v102_v0  ;;  %v113_v5 = vstv %s307_s4  ;;  %v118_v6 = vstv %s308_s5  ;;  %s501_s18 = sld [smem:[#allocation2 + $0x1b]] }
  0x26   :  { %s493_s14 = sld [smem:[#allocation2 + $0x22]]  ;;  %v105_v7 = vstv %s310_s7  ;;  %v114_v8 = vmul.f32 %v113_v5, %v102_v0  ;;  %v119_v9 = vmul.f32 %v118_v6, %v102_v0  ;;  %v123_v10 = vstv %s477_s6  ;;  %s504_s19 = sld [smem:[#allocation2 + $0x23]] }
  0x27   :  { %s495_s15 = sld [smem:[#allocation2 + $0x2a]]  ;;  %s506_s20 = sld [smem:[#allocation2 + $0x2b]]  ;;  %v106_v11 = vadd.f32 %v105_v7, %v104_v3  ;;  %v110_v12 = vstv %s479_s8  ;;  %v115_v13 = vstv %s481_s9  ;;  %v124_v14 = vmul.f32 %v123_v10, %v102_v0 }
  0x28   :  { %s510_s21 = sld [smem:[#allocation2 + $0xc]]  ;;  %v111_v15 = vadd.f32 %v110_v12, %v109_v4  ;;  %v116_v16 = vadd.f32 %v115_v13, %v114_v8  ;;  %v120_v17 = vstv %s483_s10  ;;  %v125_v18 = vstv %s485_s11  ;;  %s531_s26 = sld [smem:[#allocation2 + $0xd]] }
  0x29   :  { %s512_s22 = sld [smem:[#allocation2 + $0x14]]  ;;  %v520_v19 = vmax.f32 %v106_v11, 0.0  ;;  %v121_v20 = vadd.f32 %v120_v17, %v119_v9  ;;  %v126_v21 = vadd.f32 %v125_v18, %v124_v14  ;;  %v128_v22 = vstv %s487_s1  ;;  %s533_s27 = sld [smem:[#allocation2 + $0x15]] }
  0x2a   :  { %s516_s23 = sld [smem:[#allocation2 + $0x1c]]  ;;  %v525_v23 = vmax.f32 %v111_v15, 0.0  ;;  %v527_v24 = vmax.f32 %v116_v16, 0.0  ;;  %v130_v25 = vstv %s489_s12  ;;  %s541_s28 = sld [smem:[#allocation2 + $0x1d]]  ;;  %v147_v34 = vstv %s497_s16 }
  0x2b   :  { %s518_s24 = sld [smem:[#allocation2 + $0x24]]  ;;  %v133_v26 = vstv %s491_s13  ;;  %v535_v27 = vmax.f32 %v121_v20, 0.0  ;;  %v537_v28 = vmax.f32 %v126_v21, 0.0  ;;  %v129_v29 = vmul.f32 %v128_v22, %v520_v19  ;;  %s547_s0 = sld [smem:[#allocation2 + $0x25]] }
  0x2c   :  { %s523_s25 = sld [smem:[#allocation2 + $0x2c]]  ;;  %v136_v30 = vstv %s493_s14  ;;  %v131_v31 = vmul.f32 %v130_v25, %v525_v23  ;;  %v134_v32 = vmul.f32 %v133_v26, %v527_v24  ;;  %s549_s29 = sld [smem:[#allocation2 + $0x2d]]  ;;  %v148_v37 = vmul.f32 %v147_v34, %v520_v19 }
  0x2d   :  { %v139_v33 = vstv %s495_s15  ;;  %v137_v35 = vmul.f32 %v136_v30, %v535_v27  ;;  %v149_v38 = vstv %s499_s17  ;;  %v152_v41 = vstv %s501_s18  ;;  %s558_s30 = sld [smem:[#allocation2 + $0xe]]  ;;  %s578_s7 = sld [smem:[#allocation2 + $0xf]] }
  0x2e   :  { %v140_v36 = vmul.f32 %v139_v33, %v537_v28  ;;  %v132_v39 = vadd.f32 %v131_v31, %v129_v29  ;;  %v150_v40 = vmul.f32 %v149_v38, %v525_v23  ;;  %v155_v42 = vstv %s504_s19  ;;  %s560_s3 = sld [smem:[#allocation2 + $0x16]]  ;;  %s582_s8 = sld [smem:[#allocation2 + $0x17]] }
  0x2f   :  { %v153_v43 = vmul.f32 %v152_v41, %v527_v24  ;;  %v156_v44 = vmul.f32 %v155_v42, %v535_v27  ;;  %v158_v45 = vstv %s506_s20  ;;  %v167_v46 = vstv %s510_s21  ;;  %s566_s4 = sld [smem:[#allocation2 + $0x1e]]  ;;  %s584_s9 = sld [smem:[#allocation2 + $0x1f]] }
  0x30   :  { %v135_v47 = vadd.f32 %v134_v32, %v132_v39  ;;  %v151_v48 = vadd.f32 %v150_v40, %v148_v37  ;;  %v159_v49 = vmul.f32 %v158_v45, %v537_v28  ;;  %v168_v50 = vmul.f32 %v167_v46, %v520_v19  ;;  %s570_s5 = sld [smem:[#allocation2 + $0x26]]  ;;  %s591_s10 = sld [smem:[#allocation2 + $0x27]] }
  0x31   :  { %s572_s6 = sld [smem:[#allocation2 + $0x2e]]  ;;  %v169_v51 = vstv %s512_s22  ;;  %v172_v52 = vstv %s516_s23  ;;  %v175_v53 = vstv %s518_s24  ;;  %v187_v61 = vstv %s531_s26  ;;  %s599_s11 = sld [smem:[#allocation2 + $0x32]] }
  0x32   :  { %v178_v54 = vstv %s523_s25  ;;  %v138_v55 = vadd.f32 %v137_v35, %v135_v47  ;;  %v154_v56 = vadd.f32 %v153_v43, %v151_v48  ;;  %v170_v57 = vmul.f32 %v169_v51, %v525_v23  ;;  %s601_s1 = sld [smem:[#allocation2 + $0x33]]  ;;  %s606_s12 = sld [smem:[#allocation2 + $0x34]] }
  0x33   :  { %v173_v58 = vmul.f32 %v172_v52, %v527_v24  ;;  %v176_v59 = vmul.f32 %v175_v53, %v535_v27  ;;  %v179_v60 = vmul.f32 %v178_v54, %v537_v28  ;;  %v189_v62 = vstv %s533_s27  ;;  %s608_s13 = sld [smem:[#allocation2 + $0x35]]  ;;  %s613_s14 = sld [smem:[#allocation2 + $0x36]] }
  0x34   :  { %v141_v63 = vadd.f32 %v140_v36, %v138_v55  ;;  %v157_v0 = vadd.f32 %v156_v44, %v154_v56  ;;  %v171_v1 = vadd.f32 %v170_v57, %v168_v50  ;;  %v188_v2 = vmul.f32 %v187_v61, %v520_v19  ;;  %s618_s15 = sld [smem:[#allocation2 + $0x2f]]  ;;  %s620_s16 = sld [smem:[#allocation2 + $0x10]] }
  0x35   :  { %v190_v3 = vmul.f32 %v189_v62, %v525_v23  ;;  %v192_v4 = vstv %s541_s28  ;;  %v195_v5 = vstv %s547_s0  ;;  %v198_v6 = vstv %s549_s29  ;;  %s624_s17 = sld [smem:[#allocation2 + $0x3a]]  ;;  %s626_s18 = sld [smem:[#allocation2 + $0x3b]] }
  0x36   :  { %v160_v7 = vadd.f32 %v159_v49, %v157_v0  ;;  %v174_v8 = vadd.f32 %v173_v58, %v171_v1  ;;  %v193_v9 = vmul.f32 %v192_v4, %v527_v24  ;;  %v196_v10 = vmul.f32 %v195_v5, %v535_v27  ;;  %s631_s19 = sld [smem:[#allocation2 + $0x3c]]  ;;  %s633_s20 = sld [smem:[#allocation2 + $0x3d]] }
  0x37   :  { %v191_v11 = vadd.f32 %v190_v3, %v188_v2  ;;  %v199_v12 = vmul.f32 %v198_v6, %v537_v28  ;;  %v207_v13 = vstv %s558_s30  ;;  %v209_v14 = vstv %s560_s3  ;;  %s638_s21 = sld [smem:[#allocation2 + $0x37]]  ;;  %s640_s22 = sld [smem:[#allocation2 + $0x3e]] }
  0x38   :  { %v177_v15 = vadd.f32 %v176_v59, %v174_v8  ;;  %v208_v16 = vmul.f32 %v207_v13, %v520_v19  ;;  %v210_v17 = vmul.f32 %v209_v14, %v525_v23  ;;  %v212_v18 = vstv %s566_s4  ;;  %s645_s23 = sld [smem:[#allocation2 + $0x18]]  ;;  %s659_s27 = sld [smem:[#allocation2 + $0x11]] }
  0x39   :  { %v194_v20 = vadd.f32 %v193_v9, %v191_v11  ;;  %v213_v21 = vmul.f32 %v212_v18, %v527_v24  ;;  %v215_v22 = vstv %s570_s5  ;;  %v218_v25 = vstv %s572_s6  ;;  %s649_s24 = sld [smem:[#allocation2 + $0x20]]  ;;  %s663_s28 = sld [smem:[#allocation2 + $0x19]] }
  0x3a   :  { %v180_v26 = vadd.f32 %v179_v60, %v177_v15  ;;  %v211_v29 = vadd.f32 %v210_v17, %v208_v16  ;;  %v216_v30 = vmul.f32 %v215_v22, %v535_v27  ;;  %v219_v31 = vmul.f32 %v218_v25, %v537_v28  ;;  %s651_s25 = sld [smem:[#allocation2 + $0x28]]  ;;  %s665_s0 = sld [smem:[#allocation2 + $0x21]] }
  0x3b   :  { %v197_v32 = vadd.f32 %v196_v10, %v194_v20  ;;  %v227_v33 = vstv %s578_s7  ;;  %v229_v34 = vstv %s582_s8  ;;  %v232_v35 = vstv %s584_s9  ;;  %s655_s26 = sld [smem:[#allocation2 + $0x30]]  ;;  %s667_s29 = sld [smem:[#allocation2 + $0x29]] }
  0x3c   :  { %v214_v36 = vadd.f32 %v213_v21, %v211_v29  ;;  %v228_v37 = vmul.f32 %v227_v33, %v520_v19  ;;  %v230_v38 = vmul.f32 %v229_v34, %v525_v23  ;;  %v233_v39 = vmul.f32 %v232_v35, %v527_v24  ;;  %s671_s30 = sld [smem:[#allocation2 + $0x31]]  ;;  %s673_s3 = sld [smem:[#allocation2 + $0x3f]] }
  0x3d   :  { %v142_v40 = vstv %s599_s11  ;;  %v161_v41 = vstv %s601_s1  ;;  %v200_v42 = vadd.f32 %v199_v12, %v197_v32  ;;  %v235_v43 = vstv %s591_s10  ;;  %s678_s4 = sld [smem:[#allocation2 + $0x38]]  ;;  %s691_s6 = sld [smem:[#allocation2 + $0x39]] }
  0x3e   :  { %v143_v44 = vadd.f32 %v142_v40, %v141_v63  ;;  %v162_v45 = vadd.f32 %v161_v41, %v160_v7  ;;  %v181_v46 = vstv %s606_s12  ;;  %v201_v47 = vstv %s608_s13  ;;  %s688_s5 = sld [smem:[#allocation2 + $0x40]]  ;;  %s370_s7 = sld [smem:[#allocation2 + $0x41]] }
  0x3f   :  { %v182_v48 = vadd.f32 %v181_v46, %v180_v26  ;;  %v202_v49 = vadd.f32 %v201_v47, %v200_v42  ;;  %v217_v50 = vadd.f32 %v216_v30, %v214_v36  ;;  %v221_v51 = vstv %s613_s14  ;;  %s371_s8 = sld [smem:[#allocation2 + $0x42]]  ;;  %s437_s9 = smov [#allocation7]  }
  0x40   :  { %v144_v52 = vmax.f32 %v143_v44, 0.0  ;;  %v163_v53 = vmax.f32 %v162_v45, 0.0  ;;  %v231_v54 = vadd.f32 %v230_v38, %v228_v37  ;;  %v236_v55 = vmul.f32 %v235_v43, %v535_v27  ;;  %s296_s10 = sshll.u32 %s437_s9, 4  ;;  %s297_s10 = int_to_ptr.vmem [resolvable:$true] %s296_s10 }
  0x41   :  { %v145_v56 = vstv %s624_s17  ;;  %v164_v57 = vstv %s626_s18  ;;  %v183_v58 = vmax.f32 %v182_v48, 0.0  ;;  %v203_v59 = vmax.f32 %v202_v49, 0.0  ;;  %s407_s11 = scalar_lea.vmem %s297_s10, 128  ;;  %p412_p12 = scmp.lt.s32.totalorder %s297_s10, %s297_s10 }
  0x42   :  { %v146_v60 = vmul.f32 %v145_v56, %v144_v52  ;;  %v165_v61 = vmul.f32 %v164_v57, %v163_v53  ;;  %v184_v62 = vstv %s631_s19  ;;  %v204_v63 = vstv %s633_s20  ;;  %p408_p11 = scmp.ne.s32.totalorder %s297_s10, %s407_s11  ;;  %p413_p13 = scmp.lt.s32.totalorder %s407_s11, %s407_s11 }
  0x43   :  { %v185_v0 = vmul.f32 %v184_v62, %v183_v58  ;;  %v205_v1 = vmul.f32 %v204_v63, %v203_v59  ;;  %v220_v2 = vadd.f32 %v219_v31, %v217_v50  ;;  %v224_v4 = vstv %s640_s22 }
  0x44   :  { %v166_v3 = vadd.f32 %v165_v61, %v146_v60  ;;  %v234_v5 = vadd.f32 %v233_v39, %v231_v54  ;;  %v238_v6 = vstv %s618_s15  ;;  %v241_v9 = vstv %s638_s21  ;;  %p414_p0 = por %p413_p13, %p412_p12 }
  0x45   :  { %v222_v7 = vadd.f32 %v221_v51, %v220_v2  ;;  %v239_v8 = vmul.f32 %v238_v6, %v537_v28  ;;  %v247_v10 = vstv %s620_s16  ;;  %v249_v14 = vstv %s645_s23 }
  0x46   :  { %v186_v11 = vadd.f32 %v185_v0, %v166_v3  ;;  %v237_v12 = vadd.f32 %v236_v55, %v234_v5  ;;  %v248_v13 = vmul.f32 %v247_v10, %v520_v19  ;;  %v250_v16 = vmul.f32 %v249_v14, %v525_v23  ;;  %p415_p1 = pnand %p414_p0, %p408_p11 }
  0x47   :  { %v223_v15 = vmax.f32 %v222_v7, 0.0  ;;  %v252_v17 = vstv %s649_s24  ;;  %v255_v18 = vstv %s651_s25  ;;  %v258_v26 = vstv %s655_s26 }
  0x48   :  { %v240_v20 = vadd.f32 %v239_v8, %v237_v12  ;;  %v253_v21 = vmul.f32 %v252_v17, %v527_v24  ;;  %v251_v22 = vadd.f32 %v250_v16, %v248_v13  ;;  %v256_v25 = vmul.f32 %v255_v18, %v535_v27 }
  0x49   :  { %v206_v29 = vadd.f32 %v205_v1, %v186_v11  ;;  %v225_v30 = vmul.f32 %v224_v4, %v223_v15  ;;  %v267_v32 = vstv %s659_s27  ;;  %v259_v34 = vmul.f32 %v258_v26, %v537_v28 }
  0x4a   :  { %v242_v31 = vadd.f32 %v241_v9, %v240_v20  ;;  %v254_v33 = vadd.f32 %v253_v21, %v251_v22  ;;  %v268_v35 = vmul.f32 %v267_v32, %v520_v19  ;;  %v269_v36 = vstv %s663_s28 }
  0x4b   :  { %v270_v38 = vmul.f32 %v269_v36, %v525_v23  ;;  %v272_v39 = vstv %s665_s0  ;;  %v275_v40 = vstv %s667_s29  ;;  %v244_v41 = vstv %s673_s3 }
  0x4c   :  { %v243_v37 = vmax.f32 %v242_v31, 0.0  ;;  %v257_v42 = vadd.f32 %v256_v25, %v254_v33  ;;  %v273_v43 = vmul.f32 %v272_v39, %v527_v24  ;;  %v278_v44 = vstv %s671_s30 }
  0x4d   :  { %v261_v45 = vstv %s678_s4  ;;  %v271_v46 = vadd.f32 %v270_v38, %v268_v35  ;;  %v276_v47 = vmul.f32 %v275_v40, %v535_v27  ;;  %v226_v19 = vadd.f32 %v225_v30, %v206_v29 }
  0x4e   :  { %v260_v48 = vadd.f32 %v259_v34, %v257_v42  ;;  %v245_v49 = vmul.f32 %v244_v41, %v243_v37  ;;  %v279_v23 = vmul.f32 %v278_v44, %v537_v28  ;;  %v264_v52 = vstv %s688_s5 }
  0x4f   :  { %v274_v50 = vadd.f32 %v273_v43, %v271_v46  ;;  %v281_v55 = vstv %s691_s6  ;;  %v284_v59 = vstv %s370_s7  ;;  %v287_v62 = vstv %s371_s8 }
  0x50   :  { %v262_v51 = vadd.f32 %v261_v45, %v260_v48  ;;  %v246_v24 = vadd.f32 %v245_v49, %v226_v19 }
  0x51   :  { %v277_v53 = vadd.f32 %v276_v47, %v274_v50 }
  0x52   :  { %v263_v54 = vmax.f32 %v262_v51, 0.0 }
  0x53   :  { %v280_v56 = vadd.f32 %v279_v23, %v277_v53 }
  0x54   :  { %v265_v57 = vmul.f32 %v264_v52, %v263_v54 }
  0x55   :  { %v282_v58 = vadd.f32 %v281_v55, %v280_v56 }
  0x56   :  { %v266_v60 = vadd.f32 %v265_v57, %v246_v24 }
  0x57   :  { %v283_v27 = vmax.f32 %v282_v58, 0.0 }
  0x59   :  { %v285_v61 = vmul.f32 %v284_v59, %v283_v27 }
  0x5b   :  { %v286_v63 = vadd.f32 %v285_v61, %v266_v60 }
  0x5d   :  { %v288_v0 = vadd.f32 %v287_v62, %v286_v63 }
  0x5f   :  { %289 = vst [vmem:[#allocation7] sm:$0xff] %v288_v0 }
  0x60   :  { %418 = shalt.err (!%p415_p1)
}
  0x61   :  { %s419_s13 = scalar_lea.hbm %s721_s2, 128 }
  0x62   :  { %p420_p2 = scmp.ne.s32.totalorder %s721_s2, %s419_s13  ;;  %p423_p3 = scmp.lt.u32.totalorder %s419_s13, %s721_s2 }
  0x64   :  { %p425_p4 = pnand %p423_p3, %p420_p2 }
  0x66   :  { %428 = shalt.err (!%p425_p4)
}
  0x67   :  { %299 = dma.vmem_to_hbm [thread:$0]  %s297_s10, 128, %s721_s2, [#allocation4]  }
  0x68   :  { %433 = dma.done.wait [#allocation4], 128  }
  0x69   :  { %434 = vsyncadd [#allocation4], 4294967168 }
  0x6a   :  { %303 = vsyncpa [#allocation3], 1 }
  0x6b   :  { %304 = vsyncpa [#allocation4], 1 }
  0x6c   :  { %305 = vsyncpa [#allocation5], 1 }

</bundles_post_ra>
